<compile_context>
chip_gen: v6e
topology: v6e:2x2x1
jax: 0.10.0
libtpu: 0.0.40
codegen_flags: <defaults>
</compile_context>

<pallas_src>
import functools

import numpy as np
import jax
import jax.numpy as jnp
from jax.experimental import pallas as pl
from jax.experimental.pallas import tpu as pltpu

_K = 5     # SRM filter size
_PAD = 2   # conv padding


def _srm_filters() -> np.ndarray:
    """The three fixed 5x5 SRM filters, shape (3, 5, 5) float32."""
    f1 = np.asarray([[0, 0, 0, 0, 0],
                     [0, -1, 2, -1, 0],
                     [0, 2, -4, 2, 0],
                     [0, -1, 2, -1, 0],
                     [0, 0, 0, 0, 0]], dtype=float) / 4.0
    f2 = np.asarray([[-1, 2, -2, 2, -1],
                     [2, -6, 8, -6, 2],
                     [-2, 8, -12, 8, -2],
                     [2, -6, 8, -6, 2],
                     [-1, 2, -2, 2, -1]], dtype=float) / 12.0
    f3 = np.asarray([[0, 0, 0, 0, 0],
                     [0, 0, 0, 0, 0],
                     [0, 1, -2, 1, 0],
                     [0, 0, 0, 0, 0],
                     [0, 0, 0, 0, 0]], dtype=float) / 2.0
    return np.stack([f1, f2, f3]).astype(np.float32)


_FILTERS = _srm_filters()                     # (3, 5, 5) compile-time constants


def _build_srm_kernel(inc: int) -> np.ndarray:
    """Full (3, inc, 5, 5) weights — same as SRMConv2d_simple._build_kernel."""
    return np.repeat(_FILTERS[:, None, :, :], inc, axis=1).astype(np.float32)


def _srm_conv_kernel(x_ref, o_ref, pad_ref, *, Bn, C, H, W):
    # x_ref  : VMEM input block  (Bn, C, H, W) f32
    # o_ref  : VMEM output block (Bn, 3, H, W) f32
    # pad_ref: VMEM scratch      (Bn, H+4, W+4) f32 — padded channel sum.
    P = _PAD

    # 1) Re-zero only the 2-wide halo bands (the interior is fully rewritten
    #    below).  Done every step so correctness does not depend on scratch
    #    persistence / which core ran grid step 0.
    pad_ref[:, 0:P, :] = jnp.zeros((Bn, P, W + 2 * P), jnp.float32)
    pad_ref[:, H + P:H + 2 * P, :] = jnp.zeros((Bn, P, W + 2 * P), jnp.float32)
    pad_ref[:, :, 0:P] = jnp.zeros((Bn, H + 2 * P, P), jnp.float32)
    pad_ref[:, :, W + P:W + 2 * P] = jnp.zeros((Bn, H + 2 * P, P), jnp.float32)

    # 2) Channel sum: every SRM filter is identical across input channels, so
    #    conv(x, repeat(w2d)) == conv2d(sum_c x_c, w2d).
    xv = x_ref[...]                           # (Bn, C, H, W)
    xs = xv[:, 0]
    for c in range(1, C):
        xs = xs + xv[:, c]
    pad_ref[:, P:P + H, P:P + W] = xs

    xp = pad_ref[...]                         # (Bn, H+4, W+4), zero halo

    # 3) Horizontal (lane-shifted) passes — only 5 column windows, hoisted.
    c0 = xp[:, :, 0:W]
    c1 = xp[:, :, 1:1 + W]
    c2 = xp[:, :, 2:2 + W]
    c3 = xp[:, :, 3:3 + W]
    c4 = xp[:, :, 4:4 + W]
    s13 = c1 + c3
    A = s13 - 2.0 * c2                        # a = [1,-2,1]          (Bn,H+4,W)
    G = 2.0 * (s13 - c2) - (c0 + c4)          # g = [-1,2,-2,2,-1]    (Bn,H+4,W)

    # 4) Vertical (sublane-shifted) passes + per-filter combination.
    A2 = A[:, 2:2 + H]
    AA = (A[:, 1:1 + H] + A[:, 3:3 + H]) - 2.0 * A2              # a^T a
    GG = (2.0 * ((G[:, 1:1 + H] + G[:, 3:3 + H]) - G[:, 2:2 + H])
          - (G[:, 0:H] + G[:, 4:4 + H]))                         # g^T g

    out1 = -0.25 * AA                         # f1 = -(1/4) a^T a
    out2 = (-1.0 / 12.0) * (GG + 2.0 * AA)    # f2 = -(1/12)(g^T g + 2 a^T a)
    out3 = 0.5 * A2                           # f3 = (1/2) delta_2^T a

    # 5) Hardtanh(-3, 3) and store.
    o_ref[:, 0] = jnp.clip(out1, -3.0, 3.0)
    o_ref[:, 1] = jnp.clip(out2, -3.0, 3.0)
    o_ref[:, 2] = jnp.clip(out3, -3.0, 3.0)


def srm_conv2d_simple(x: jax.Array, inc: int = 3, *,
                      max_images_per_step: int = 32) -> jax.Array:
    """Forward pass of SRMConv2d_simple.  x: (N, inc, H, W)."""
    N, C, H, W = x.shape
    assert C == inc, f"expected {inc} input channels, got {C}"
    x = x.astype(jnp.float32)

    # Images per grid step: amortize per-step overhead for small images while
    # keeping the (double-buffered) block inside VMEM.
    bytes_per_image = 4 * (2 * C * H * W            # input block (x2 buffers)
                           + 2 * 3 * H * W          # output block (x2 buffers)
                           + (H + 2 * _PAD) * (W + 2 * _PAD))   # scratch
    budget = 24 * 2 ** 20                           # conservative for v5e/v7x
    bn = int(max(1, min(max_images_per_step,
                        budget // max(bytes_per_image, 1), N)))
    grid_n = pl.cdiv(N, bn)

    kernel = functools.partial(_srm_conv_kernel, Bn=bn, C=C, H=H, W=W)

    params = dict(dimension_semantics=("parallel",))
    est = bn * bytes_per_image
    if est > 30 * 2 ** 20:
        # Whole-image blocks for big images: raise the scoped-VMEM limit.
        # TODO(synk): replace with row-strip halo tiling for very large H*W.
        params["vmem_limit_bytes"] = int(min(est * 5 // 4, 120 * 2 ** 20))

    return pl.pallas_call(
        kernel,
        out_shape=jax.ShapeDtypeStruct((N, 3, H, W), jnp.float32),
        grid=(grid_n,),
        in_specs=[
            pl.BlockSpec((bn, C, H, W), lambda n: (n, 0, 0, 0)),
        ],
        out_specs=pl.BlockSpec((bn, 3, H, W), lambda n: (n, 0, 0, 0)),
        scratch_shapes=[
            pltpu.VMEM((bn, H + 2 * _PAD, W + 2 * _PAD), jnp.float32),
        ],
        compiler_params=pltpu.CompilerParams(**params),
    )(x)


def _reference(x: jax.Array, inc: int = 3) -> jax.Array:
    """Pure-JAX reference (matches F.conv2d + Hardtanh)."""
    w = jnp.asarray(_build_srm_kernel(inc))
    out = jax.lax.conv_general_dilated(
        x.astype(jnp.float32), w, window_strides=(1, 1),
        padding=((_PAD, _PAD), (_PAD, _PAD)),
        dimension_numbers=("NCHW", "OIHW", "NCHW"))
    return jnp.clip(out, -3.0, 3.0)


if __name__ == "__main__":
    N, C, H, W = 2, 3, 16, 16
    key = jax.random.PRNGKey(0)
    x = jax.random.normal(key, (N, C, H, W), dtype=jnp.float32) * 2.0

    out = jax.block_until_ready(srm_conv2d_simple(x, inc=C))

    ref = _reference(x, inc=C)
    # channel-sum-first + separable evaluation reassociate the f32 sums, so
    # allow slightly more than bit-exact tolerance vs. the direct conv.
    np.testing.assert_allclose(np.asarray(out), np.asarray(ref),
                               rtol=1e-5, atol=2e-5)
    print("KERNEL_OK")
</pallas_src>

<mosaic_0001>
module attributes {stable_mosaic.version = 11 : i64} {
  func.func @_srm_conv_kernel(%arg0: i32, %arg1: memref<2x3x16x16xf32, #tpu.memory_space<vmem>>, %arg2: memref<2x3x16x16xf32, #tpu.memory_space<vmem>>, %arg3: memref<2x20x20xf32, #tpu.memory_space<vmem>>) attributes {dimension_semantics = [#tpu.dimension_semantics<parallel>], iteration_bounds = array<i64: 1>, scalar_prefetch = 0 : i64, scratch_operands = 1 : i64, tpu.core_type = #tpu.core_type<tc>, window_params = [{transform_indices = @transform_0, window_bounds = array<i64: 2, 3, 16, 16>}, {transform_indices = @transform_1, window_bounds = array<i64: 2, 3, 16, 16>}]} {
    %cst = arith.constant 0.000000e+00 : f32
    %0 = vector.broadcast %cst : f32 to vector<2x2x20xf32>
    %c0 = arith.constant 0 : index
    %c0_0 = arith.constant 0 : index
    %c0_1 = arith.constant 0 : index
    %1 = vector.load %arg3[%c0, %c0_0, %c0_1] : memref<2x20x20xf32, #tpu.memory_space<vmem>>, vector<2x2x20xf32>
    tpu.vector_store %arg3[%c0, %c0_0, %c0_1], %0 {strides = array<i32>} : memref<2x20x20xf32, #tpu.memory_space<vmem>>, vector<2x2x20xf32>,
    %cst_2 = arith.constant 0.000000e+00 : f32
    %2 = vector.broadcast %cst_2 : f32 to vector<2x2x20xf32>
    %c0_3 = arith.constant 0 : index
    %c18 = arith.constant 18 : index
    %c0_4 = arith.constant 0 : index
    %3 = vector.load %arg3[%c0_3, %c18, %c0_4] : memref<2x20x20xf32, #tpu.memory_space<vmem>>, vector<2x2x20xf32>
    tpu.vector_store %arg3[%c0_3, %c18, %c0_4], %2 {strides = array<i32>} : memref<2x20x20xf32, #tpu.memory_space<vmem>>, vector<2x2x20xf32>,
    %cst_5 = arith.constant 0.000000e+00 : f32
    %4 = vector.broadcast %cst_5 : f32 to vector<2x20x2xf32>
    %c0_6 = arith.constant 0 : index
    %c0_7 = arith.constant 0 : index
    %c0_8 = arith.constant 0 : index
    %5 = vector.load %arg3[%c0_6, %c0_7, %c0_8] : memref<2x20x20xf32, #tpu.memory_space<vmem>>, vector<2x20x2xf32>
    tpu.vector_store %arg3[%c0_6, %c0_7, %c0_8], %4 {strides = array<i32>} : memref<2x20x20xf32, #tpu.memory_space<vmem>>, vector<2x20x2xf32>,
    %cst_9 = arith.constant 0.000000e+00 : f32
    %6 = vector.broadcast %cst_9 : f32 to vector<2x20x2xf32>
    %c0_10 = arith.constant 0 : index
    %c0_11 = arith.constant 0 : index
    %c18_12 = arith.constant 18 : index
    %7 = vector.load %arg3[%c0_10, %c0_11, %c18_12] : memref<2x20x20xf32, #tpu.memory_space<vmem>>, vector<2x20x2xf32>
    tpu.vector_store %arg3[%c0_10, %c0_11, %c18_12], %6 {strides = array<i32>} : memref<2x20x20xf32, #tpu.memory_space<vmem>>, vector<2x20x2xf32>,
    %c0_13 = arith.constant 0 : index
    %c0_14 = arith.constant 0 : index
    %c0_15 = arith.constant 0 : index
    %c0_16 = arith.constant 0 : index
    %8 = vector.load %arg1[%c0_13, %c0_14, %c0_15, %c0_16] : memref<2x3x16x16xf32, #tpu.memory_space<vmem>>, vector<2x3x16x16xf32>
    %9 = vector.extract_strided_slice %8 {offsets = [0, 0, 0, 0], sizes = [2, 1, 16, 16], strides = [1, 1, 1, 1]} : vector<2x3x16x16xf32> to vector<2x1x16x16xf32>
    %10 = vector.shape_cast %9 : vector<2x1x16x16xf32> to vector<2x16x16xf32>
    %11 = vector.extract_strided_slice %8 {offsets = [0, 1, 0, 0], sizes = [2, 1, 16, 16], strides = [1, 1, 1, 1]} : vector<2x3x16x16xf32> to vector<2x1x16x16xf32>
    %12 = vector.shape_cast %11 : vector<2x1x16x16xf32> to vector<2x16x16xf32>
    %13 = arith.addf %10, %12 : vector<2x16x16xf32>
    %14 = vector.extract_strided_slice %8 {offsets = [0, 2, 0, 0], sizes = [2, 1, 16, 16], strides = [1, 1, 1, 1]} : vector<2x3x16x16xf32> to vector<2x1x16x16xf32>
    %15 = vector.shape_cast %14 : vector<2x1x16x16xf32> to vector<2x16x16xf32>
    %16 = arith.addf %13, %15 : vector<2x16x16xf32>
    %c0_17 = arith.constant 0 : index
    %c2 = arith.constant 2 : index
    %c2_18 = arith.constant 2 : index
    %17 = vector.load %arg3[%c0_17, %c2, %c2_18] : memref<2x20x20xf32, #tpu.memory_space<vmem>>, vector<2x16x16xf32>
    tpu.vector_store %arg3[%c0_17, %c2, %c2_18], %16 {strides = array<i32>} : memref<2x20x20xf32, #tpu.memory_space<vmem>>, vector<2x16x16xf32>,
    %c0_19 = arith.constant 0 : index
    %c0_20 = arith.constant 0 : index
    %c0_21 = arith.constant 0 : index
    %18 = vector.load %arg3[%c0_19, %c0_20, %c0_21] : memref<2x20x20xf32, #tpu.memory_space<vmem>>, vector<2x20x20xf32>
    %19 = vector.extract_strided_slice %18 {offsets = [0, 0, 0], sizes = [2, 20, 16], strides = [1, 1, 1]} : vector<2x20x20xf32> to vector<2x20x16xf32>
    %20 = vector.extract_strided_slice %18 {offsets = [0, 0, 1], sizes = [2, 20, 16], strides = [1, 1, 1]} : vector<2x20x20xf32> to vector<2x20x16xf32>
    %21 = vector.extract_strided_slice %18 {offsets = [0, 0, 2], sizes = [2, 20, 16], strides = [1, 1, 1]} : vector<2x20x20xf32> to vector<2x20x16xf32>
    %22 = vector.extract_strided_slice %18 {offsets = [0, 0, 3], sizes = [2, 20, 16], strides = [1, 1, 1]} : vector<2x20x20xf32> to vector<2x20x16xf32>
    %23 = vector.extract_strided_slice %18 {offsets = [0, 0, 4], sizes = [2, 20, 16], strides = [1, 1, 1]} : vector<2x20x20xf32> to vector<2x20x16xf32>
    %24 = arith.addf %20, %22 : vector<2x20x16xf32>
    %cst_22 = arith.constant 2.000000e+00 : f32
    %25 = vector.broadcast %cst_22 : f32 to vector<2x20x16xf32>
    %26 = arith.mulf %25, %21 : vector<2x20x16xf32>
    %27 = arith.subf %24, %26 : vector<2x20x16xf32>
    %28 = arith.subf %24, %21 : vector<2x20x16xf32>
    %cst_23 = arith.constant 2.000000e+00 : f32
    %29 = vector.broadcast %cst_23 : f32 to vector<2x20x16xf32>
    %30 = arith.mulf %29, %28 : vector<2x20x16xf32>
    %31 = arith.addf %19, %23 : vector<2x20x16xf32>
    %32 = arith.subf %30, %31 : vector<2x20x16xf32>
    %33 = vector.extract_strided_slice %27 {offsets = [0, 2, 0], sizes = [2, 16, 16], strides = [1, 1, 1]} : vector<2x20x16xf32> to vector<2x16x16xf32>
    %34 = vector.extract_strided_slice %27 {offsets = [0, 1, 0], sizes = [2, 16, 16], strides = [1, 1, 1]} : vector<2x20x16xf32> to vector<2x16x16xf32>
    %35 = vector.extract_strided_slice %27 {offsets = [0, 3, 0], sizes = [2, 16, 16], strides = [1, 1, 1]} : vector<2x20x16xf32> to vector<2x16x16xf32>
    %36 = arith.addf %34, %35 : vector<2x16x16xf32>
    %cst_24 = arith.constant 2.000000e+00 : f32
    %37 = vector.broadcast %cst_24 : f32 to vector<2x16x16xf32>
    %38 = arith.mulf %37, %33 : vector<2x16x16xf32>
    %39 = arith.subf %36, %38 : vector<2x16x16xf32>
    %40 = vector.extract_strided_slice %32 {offsets = [0, 1, 0], sizes = [2, 16, 16], strides = [1, 1, 1]} : vector<2x20x16xf32> to vector<2x16x16xf32>
    %41 = vector.extract_strided_slice %32 {offsets = [0, 3, 0], sizes = [2, 16, 16], strides = [1, 1, 1]} : vector<2x20x16xf32> to vector<2x16x16xf32>
    %42 = arith.addf %40, %41 : vector<2x16x16xf32>
    %43 = vector.extract_strided_slice %32 {offsets = [0, 2, 0], sizes = [2, 16, 16], strides = [1, 1, 1]} : vector<2x20x16xf32> to vector<2x16x16xf32>
    %44 = arith.subf %42, %43 : vector<2x16x16xf32>
    %cst_25 = arith.constant 2.000000e+00 : f32
    %45 = vector.broadcast %cst_25 : f32 to vector<2x16x16xf32>
    %46 = arith.mulf %45, %44 : vector<2x16x16xf32>
    %47 = vector.extract_strided_slice %32 {offsets = [0, 0, 0], sizes = [2, 16, 16], strides = [1, 1, 1]} : vector<2x20x16xf32> to vector<2x16x16xf32>
    %48 = vector.extract_strided_slice %32 {offsets = [0, 4, 0], sizes = [2, 16, 16], strides = [1, 1, 1]} : vector<2x20x16xf32> to vector<2x16x16xf32>
    %49 = arith.addf %47, %48 : vector<2x16x16xf32>
    %50 = arith.subf %46, %49 : vector<2x16x16xf32>
    %cst_26 = arith.constant -2.500000e-01 : f32
    %51 = vector.broadcast %cst_26 : f32 to vector<2x16x16xf32>
    %52 = arith.mulf %51, %39 : vector<2x16x16xf32>
    %cst_27 = arith.constant 2.000000e+00 : f32
    %53 = vector.broadcast %cst_27 : f32 to vector<2x16x16xf32>
    %54 = arith.mulf %53, %39 : vector<2x16x16xf32>
    %55 = arith.addf %50, %54 : vector<2x16x16xf32>
    %cst_28 = arith.constant -0.0833333358 : f32
    %56 = vector.broadcast %cst_28 : f32 to vector<2x16x16xf32>
    %57 = arith.mulf %56, %55 : vector<2x16x16xf32>
    %cst_29 = arith.constant 5.000000e-01 : f32
    %58 = vector.broadcast %cst_29 : f32 to vector<2x16x16xf32>
    %59 = arith.mulf %58, %33 : vector<2x16x16xf32>
    %cst_30 = arith.constant -3.000000e+00 : f32
    %cst_31 = arith.constant 3.000000e+00 : f32
    %60 = vector.broadcast %cst_30 : f32 to vector<2x16x16xf32>
    %61 = arith.maximumf %60, %52 : vector<2x16x16xf32>
    %62 = vector.broadcast %cst_31 : f32 to vector<2x16x16xf32>
    %63 = arith.minimumf %62, %61 : vector<2x16x16xf32>
    %c0_32 = arith.constant 0 : index
    %c0_33 = arith.constant 0 : index
    %c0_34 = arith.constant 0 : index
    %c0_35 = arith.constant 0 : index
    %64 = vector.load %arg2[%c0_32, %c0_33, %c0_34, %c0_35] : memref<2x3x16x16xf32, #tpu.memory_space<vmem>>, vector<2x1x16x16xf32>
    %65 = vector.shape_cast %64 : vector<2x1x16x16xf32> to vector<2x16x16xf32>
    %66 = vector.shape_cast %63 : vector<2x16x16xf32> to vector<2x1x16x16xf32>
    tpu.vector_store %arg2[%c0_32, %c0_33, %c0_34, %c0_35], %66 {strides = array<i32>} : memref<2x3x16x16xf32, #tpu.memory_space<vmem>>, vector<2x1x16x16xf32>,
    %cst_36 = arith.constant -3.000000e+00 : f32
    %cst_37 = arith.constant 3.000000e+00 : f32
    %67 = vector.broadcast %cst_36 : f32 to vector<2x16x16xf32>
    %68 = arith.maximumf %67, %57 : vector<2x16x16xf32>
    %69 = vector.broadcast %cst_37 : f32 to vector<2x16x16xf32>
    %70 = arith.minimumf %69, %68 : vector<2x16x16xf32>
    %c0_38 = arith.constant 0 : index
    %c1 = arith.constant 1 : index
    %c0_39 = arith.constant 0 : index
    %c0_40 = arith.constant 0 : index
    %71 = vector.load %arg2[%c0_38, %c1, %c0_39, %c0_40] : memref<2x3x16x16xf32, #tpu.memory_space<vmem>>, vector<2x1x16x16xf32>
    %72 = vector.shape_cast %71 : vector<2x1x16x16xf32> to vector<2x16x16xf32>
    %73 = vector.shape_cast %70 : vector<2x16x16xf32> to vector<2x1x16x16xf32>
    tpu.vector_store %arg2[%c0_38, %c1, %c0_39, %c0_40], %73 {strides = array<i32>} : memref<2x3x16x16xf32, #tpu.memory_space<vmem>>, vector<2x1x16x16xf32>,
    %cst_41 = arith.constant -3.000000e+00 : f32
    %cst_42 = arith.constant 3.000000e+00 : f32
    %74 = vector.broadcast %cst_41 : f32 to vector<2x16x16xf32>
    %75 = arith.maximumf %74, %59 : vector<2x16x16xf32>
    %76 = vector.broadcast %cst_42 : f32 to vector<2x16x16xf32>
    %77 = arith.minimumf %76, %75 : vector<2x16x16xf32>
    %c0_43 = arith.constant 0 : index
    %c2_44 = arith.constant 2 : index
    %c0_45 = arith.constant 0 : index
    %c0_46 = arith.constant 0 : index
    %78 = vector.load %arg2[%c0_43, %c2_44, %c0_45, %c0_46] : memref<2x3x16x16xf32, #tpu.memory_space<vmem>>, vector<2x1x16x16xf32>
    %79 = vector.shape_cast %78 : vector<2x1x16x16xf32> to vector<2x16x16xf32>
    %80 = vector.shape_cast %77 : vector<2x16x16xf32> to vector<2x1x16x16xf32>
    tpu.vector_store %arg2[%c0_43, %c2_44, %c0_45, %c0_46], %80 {strides = array<i32>} : memref<2x3x16x16xf32, #tpu.memory_space<vmem>>, vector<2x1x16x16xf32>,
    return
  }
  func.func @transform_0(%arg0: i32) -> (i32, i32, i32, i32) {
    %c0_i32 = arith.constant 0 : i32
    %c0_i32_0 = arith.constant 0 : i32
    %c0_i32_1 = arith.constant 0 : i32
    %c0_i32_2 = arith.constant 0 : i32
    return %arg0, %c0_i32, %c0_i32_0, %c0_i32_1 : i32, i32, i32, i32
  }
  func.func @transform_1(%arg0: i32) -> (i32, i32, i32, i32) {
    %c0_i32 = arith.constant 0 : i32
    %c0_i32_0 = arith.constant 0 : i32
    %c0_i32_1 = arith.constant 0 : i32
    %c0_i32_2 = arith.constant 0 : i32
    return %arg0, %c0_i32, %c0_i32_0, %c0_i32_1 : i32, i32, i32, i32
  }
}

</mosaic_0001>

<bundles_post_ra>
// kernel: tpu_custom_call.1
= control target key start
LH: loop header
LB: loop body
LE: loop exit
PB: predicated region body
PF: predicated region fallthrough
CT: control target
= control target key end

     0   :  { %6 = vsyncpa [#allocation4], 0  ;;  %s911_s0 = inlined_call_operand.hbm [shape: f32[2,3,16,16], index: 0, kind: input, shape index: {}]   ;;  %s912_s1 = inlined_call_operand.hbm [shape: f32[2,3,16,16], index: 1, kind: output, shape index: {}]  }
   0x1   :  { %7 = vsyncpa [#allocation5], 0  ;;  %s655_s6 = smov [#allocation3]  }
   0x2   :  { %s13_s7 = sshll.u32 %s655_s6, 4  ;;  %s14_s7 = int_to_ptr.vmem [resolvable:$true] %s13_s7 }
   0x3   :  { %s619_s8 = scalar_lea.vmem %s14_s7, 1536  ;;  %p624_p1 = scmp.lt.s32.totalorder %s14_s7, %s14_s7 }
   0x4   :  { %p620_p0 = scmp.ne.s32.totalorder %s14_s7, %s619_s8  ;;  %p625_p2 = scmp.lt.s32.totalorder %s619_s8, %s619_s8 }
   0x6   :  { %p626_p3 = por %p625_p2, %p624_p1 }
   0x8   :  { %p627_p4 = pnand %p626_p3, %p620_p0 }
   0xa   :  { %630 = shalt.err (!%p627_p4)
}
   0xb   :  { %s656_s9 = smov 128   ;;  %s657_s10 = smov 8  }
   0xc   :  { %19 = dma.hbm_to_vmem [thread:$0]  %s911_s0, 1536, %s14_s7, [#allocation4], %s656_s9, %s656_s9, %s657_s10  }
   0xd   :  { %651 = dma.done.wait [#allocation4], 1536  }
   0xe   :  { %652 = vsyncadd [#allocation4], 4294965760  ;;  %vm23_vm0 = vcmask 156672   ;;  %vm28_vm1 = vcmask 15360   ;;  %vm36_vm2 = vcmask 162960   ;;  %v658_v0 = vmov 0.0  }
   0xf   :  { %24 = vst.msk [vmem:[#allocation2] sm:$0x3] %vm23_vm0, %v658_v0  ;;  %25 = vst.msk [vmem:[#allocation2 + $0x18] sm:$0x3] %vm23_vm0, %v658_v0  ;;  %vm31_vm3 = vcmask 11264   ;;  %vm39_vm4 = vcmask 158864  }
  0x10   :  { %30 = vst.msk [vmem:[#allocation2 + $0x8] sm:$0xff] %vm28_vm1, %v658_v0  ;;  %34 = vst.msk [vmem:[#allocation2 + $0x20] sm:$0xff] %vm28_vm1, %v658_v0  ;;  %v44_v1 = vld [vmem:[#allocation3] sm:$0xff]  ;;  %v46_v2 = vld [vmem:[#allocation3 + $0x10] sm:$0xff]  ;;  %s659_s0 = smov 2   ;;  %vm80_vm5 = vcmask 146448  }
  0x11   :  { %26 = vst.msk [vmem:[#allocation2 + $0x12] sm:$0x3] %vm23_vm0, %v658_v0  ;;  %27 = vst.msk [vmem:[#allocation2 + $0x2a] sm:$0x3] %vm23_vm0, %v658_v0  ;;  %v48_v3 = vld [vmem:[#allocation3 + $0x20] sm:$0xff]  ;;  %v56_v4 = vadd.f32 %v46_v2, %v44_v1  ;;  %v50_v5 = vld [vmem:[#allocation3 + $0x30] sm:$0xff] }
  0x12   :  { %29 = vst.msk [vmem:[#allocation2] sm:$0xff] %vm28_vm1, %v658_v0  ;;  %33 = vst.msk [vmem:[#allocation2 + $0x18] sm:$0xff] %vm28_vm1, %v658_v0  ;;  %v52_v6 = vld [vmem:[#allocation3 + $0x40] sm:$0xff]  ;;  %v54_v7 = vld [vmem:[#allocation3 + $0x50] sm:$0xff]  ;;  %s660_s13 = smov 124   ;;  %s661_s14 = smov 126  }
  0x13   :  { %38 = vst.msk [vmem:[#allocation2 + $0x8] sm:$0xff] %vm36_vm2, %v658_v0  ;;  %42 = vst.msk [vmem:[#allocation2 + $0x20] sm:$0xff] %vm36_vm2, %v658_v0  ;;  %v58_v8 = vadd.f32 %v52_v6, %v50_v5  ;;  %v45_v9 = vld [vmem:[#allocation3 + $0x8] sm:$0xff]  ;;  %v47_v10 = vld [vmem:[#allocation3 + $0x18] sm:$0xff]  ;;  %v60_v12 = vadd.f32 %v56_v4, %v48_v3  ;;  %s662_s15 = smov 127   ;;  %s663_s16 = smov 1  }
  0x14   :  { %32 = vst.msk [vmem:[#allocation2 + $0x10] sm:$0xf] %vm31_vm3, %v658_v0  ;;  %35 = vst.msk [vmem:[#allocation2 + $0x28] sm:$0xf] %vm31_vm3, %v658_v0  ;;  %v49_v11 = vld [vmem:[#allocation3 + $0x28] sm:$0xff]  ;;  %v57_v13 = vadd.f32 %v47_v10, %v45_v9  ;;  %v51_v14 = vld [vmem:[#allocation3 + $0x38] sm:$0xff] }
  0x15   :  { %37 = vst.msk [vmem:[#allocation2] sm:$0xff] %vm36_vm2, %v658_v0  ;;  %41 = vst.msk [vmem:[#allocation2 + $0x18] sm:$0xff] %vm36_vm2, %v658_v0  ;;  %v53_v15 = vld [vmem:[#allocation3 + $0x48] sm:$0xff]  ;;  %v55_v16 = vld [vmem:[#allocation3 + $0x58] sm:$0xff]  ;;  %v62_v17 = vadd.f32 %v58_v8, %v54_v7  ;;  %68 = vrot.lane.b32.xlu0 %v60_v12, %s659_s0  ;;  %vm247_vm6 = vcmask 1045504   ;;  %vm282_vm7 = vcmask 1046528  }
  0x16   :  { %40 = vst.msk [vmem:[#allocation2 + $0x10] sm:$0xf] %vm39_vm4, %v658_v0  ;;  %43 = vst.msk [vmem:[#allocation2 + $0x28] sm:$0xf] %vm39_vm4, %v658_v0  ;;  %v59_v18 = vadd.f32 %v53_v15, %v51_v14  ;;  %v61_v19 = vadd.f32 %v57_v13, %v49_v11  ;;  %vm361_vm8 = vcmask 1043456   ;;  %vm384_vm9 = vcmask 1040384  }
  0x17   :  { %72 = vrot.lane.b32.xlu1 %v62_v17, %s659_s0  ;;  %vm558_vm10 = vcmask 130050   ;;  %vm471_vm11 = vcmask 130048   ;;  %vm561_vm12 = vcmask 123904   ;;  %vm473_vm13 = vcmask 122880   ;;  %s664_s17 = smov [#allocation6]  }
  0x18   :  { %v63_v20 = vadd.f32 %v59_v18, %v55_v16  ;;  %vm469_vm14 = vcmask 130049   ;;  %s571_s18 = sshll.u32 %s664_s17, 4  ;;  %s572_s18 = int_to_ptr.vmem [resolvable:$true] %s571_s18 }
  0x19   :  { %70 = vrot.lane.b32.xlu0 %v61_v19, %s659_s0  ;;  %s631_s19 = scalar_lea.vmem %s572_s18, 1536  ;;  %p636_p6 = scmp.lt.s32.totalorder %s572_s18, %s572_s18 }
  0x1a   :  { %p632_p5 = scmp.ne.s32.totalorder %s572_s18, %s631_s19  ;;  %p637_p7 = scmp.lt.s32.totalorder %s631_s19, %s631_s19 }
  0x1b   :  { %74 = vrot.lane.b32.xlu1 %v63_v20, %s659_s0 }
  0x1c   :  { %p638_p8 = por %p637_p7, %p636_p6 }
  0x1e   :  { %p639_p9 = pnand %p638_p8, %p632_p5 }
  0x87   :  { %v69_v21 = vpop.permute.xlu0 %68 }
  0x88   :  { %81 = vst.msk [vmem:[#allocation2 + $0x2] sm:$0xff] %vm80_vm5, %v69_v21 }
  0x89   :  { %v73_v22 = vpop.permute.xlu1 %72 }
  0x8a   :  { %83 = vst.msk [vmem:[#allocation2 + $0x1a] sm:$0xff] %vm80_vm5, %v73_v22 }
  0x8b   :  { %v71_v23 = vpop.permute.xlu0 %70 }
  0x8c   :  { %82 = vst.msk [vmem:[#allocation2 + $0xa] sm:$0xff] %vm80_vm5, %v71_v23 }
  0x8d   :  { %v75_v24 = vpop.permute.xlu1 %74 }
  0x8e   :  { %84 = vst.msk [vmem:[#allocation2 + $0x22] sm:$0xff] %vm80_vm5, %v75_v24 }
  0x8f   :  { %v685_v25 = vld [vmem:[#allocation2] sm:$0xff] }
  0x90   :  { %187 = vrot.lane.b32.xlu0 %v685_v25, %s660_s13  ;;  %v121_v31 = vmul.f32 2.0, %v685_v25 }
  0x91   :  { %v694_v28 = vld [vmem:[#allocation2 + $0x18] sm:$0xff] }
  0x92   :  { %v124_v34 = vmul.f32 2.0, %v694_v28 }
  0x93   :  { %v688_v26 = vld [vmem:[#allocation2 + $0x8] sm:$0xff]  ;;  %v690_v27 = vld [vmem:[#allocation2 + $0x10] sm:$0xf] }
  0x94   :  { %189 = vrot.lane.b32.xlu1 %v688_v26, %s660_s13  ;;  %191 = vrot.lane.b32.xlu0 %v690_v27, %s660_s13  ;;  %v122_v32 = vmul.f32 2.0, %v688_v26  ;;  %v123_v33 = vmul.f32 2.0, %v690_v27 }
  0x95   :  { %v696_v29 = vld [vmem:[#allocation2 + $0x20] sm:$0xff]  ;;  %v700_v30 = vld [vmem:[#allocation2 + $0x28] sm:$0xf] }
  0x96   :  { %v125_v48 = vmul.f32 2.0, %v696_v29  ;;  %v126_v51 = vmul.f32 2.0, %v700_v30 }
  0x98   :  { %193 = vrot.lane.b32.xlu1 %v694_v28, %s660_s13  ;;  %195 = vrot.lane.b32.xlu0 %v696_v29, %s660_s13 }
  0x9c   :  { %197 = vrot.lane.b32.xlu1 %v700_v30, %s660_s13  ;;  %97 = vrot.lane.b32.xlu0 %v685_v25, %s661_s14 }
  0xa0   :  { %99 = vrot.lane.b32.xlu1 %v688_v26, %s661_s14  ;;  %101 = vrot.lane.b32.xlu0 %v690_v27, %s661_s14 }
  0xa4   :  { %103 = vrot.lane.b32.xlu1 %v694_v28, %s661_s14  ;;  %105 = vrot.lane.b32.xlu0 %v696_v29, %s661_s14 }
  0xa8   :  { %107 = vrot.lane.b32.xlu1 %v700_v30, %s661_s14  ;;  %157 = vrot.lane.b32.xlu0 %v685_v25, %s662_s15 }
  0xac   :  { %159 = vrot.lane.b32.xlu1 %v688_v26, %s662_s15  ;;  %161 = vrot.lane.b32.xlu0 %v690_v27, %s662_s15 }
  0xb0   :  { %163 = vrot.lane.b32.xlu1 %v694_v28, %s662_s15  ;;  %165 = vrot.lane.b32.xlu0 %v696_v29, %s662_s15 }
  0xb4   :  { %167 = vrot.lane.b32.xlu1 %v700_v30, %s662_s15  ;;  %133 = vrot.lane.b32.xlu0 %v121_v31, %s662_s15 }
  0xb8   :  { %135 = vrot.lane.b32.xlu1 %v122_v32, %s662_s15  ;;  %137 = vrot.lane.b32.xlu0 %v123_v33, %s662_s15 }
  0xbc   :  { %139 = vrot.lane.b32.xlu1 %v124_v34, %s662_s15 }
 0x102   :  { %v188_v35 = vpop.permute.xlu0 %187 }
 0x103   :  { %v205_v36 = vadd.f32 %v188_v35, %v685_v25 }
 0x105   :  { %217 = vrot.lane.b32.xlu0 %v205_v36, %s663_s16 }
 0x106   :  { %v190_v37 = vpop.permute.xlu1 %189  ;;  %v192_v38 = vpop.permute.xlu0 %191 }
 0x107   :  { %v206_v39 = vadd.f32 %v190_v37, %v688_v26  ;;  %v207_v40 = vadd.f32 %v192_v38, %v690_v27 }
 0x109   :  { %219 = vrot.lane.b32.xlu1 %v206_v39, %s663_s16  ;;  %221 = vrot.lane.b32.xlu0 %v207_v40, %s663_s16 }
 0x10a   :  { %v194_v41 = vpop.permute.xlu1 %193  ;;  %v196_v42 = vpop.permute.xlu0 %195 }
 0x10b   :  { %v208_v43 = vadd.f32 %v194_v41, %v694_v28  ;;  %v209_v44 = vadd.f32 %v196_v42, %v696_v29 }
 0x10d   :  { %223 = vrot.lane.b32.xlu1 %v208_v43, %s663_s16  ;;  %225 = vrot.lane.b32.xlu0 %v209_v44, %s663_s16 }
 0x10e   :  { %v198_v45 = vpop.permute.xlu1 %197  ;;  %v98_v46 = vpop.permute.xlu0 %97 }
 0x10f   :  { %v210_v47 = vadd.f32 %v198_v45, %v700_v30  ;;  %v740_v54 = vadd.f32 %v98_v46, %v685_v25 }
 0x111   :  { %227 = vrot.lane.b32.xlu1 %v210_v47, %s663_s16  ;;  %141 = vrot.lane.b32.xlu0 %v125_v48, %s662_s15 }
 0x112   :  { %v100_v49 = vpop.permute.xlu1 %99  ;;  %v102_v50 = vpop.permute.xlu0 %101 }
 0x113   :  { %v747_v58 = vadd.f32 %v100_v49, %v688_v26  ;;  %v750_v59 = vadd.f32 %v102_v50, %v690_v27 }
 0x115   :  { %143 = vrot.lane.b32.xlu1 %v126_v51, %s662_s15 }
 0x116   :  { %v104_v52 = vpop.permute.xlu1 %103  ;;  %v106_v53 = vpop.permute.xlu0 %105 }
 0x117   :  { %v761_v0 = vadd.f32 %v104_v52, %v694_v28  ;;  %v764_v1 = vadd.f32 %v106_v53, %v696_v29 }
 0x11a   :  { %v108_v55 = vpop.permute.xlu1 %107  ;;  %v742_v56 = vpop.permute.xlu0 %157 }
 0x11b   :  { %v175_v57 = vsub.f32 %v740_v54, %v742_v56  ;;  %v775_v6 = vadd.f32 %v108_v55, %v700_v30 }
 0x11d   :  { %v181_v48 = vmul.f32 2.0, %v175_v57 }
 0x11e   :  { %v752_v60 = vpop.permute.xlu1 %159  ;;  %v754_v61 = vpop.permute.xlu0 %161 }
 0x11f   :  { %v176_v62 = vsub.f32 %v747_v58, %v752_v60  ;;  %v177_v63 = vsub.f32 %v750_v59, %v754_v61 }
 0x121   :  { %v182_v51 = vmul.f32 2.0, %v176_v62  ;;  %v183_v52 = vmul.f32 2.0, %v177_v63 }
 0x122   :  { %v766_v2 = vpop.permute.xlu1 %163  ;;  %v768_v3 = vpop.permute.xlu0 %165 }
 0x123   :  { %v178_v4 = vsub.f32 %v761_v0, %v766_v2  ;;  %v179_v5 = vsub.f32 %v764_v1, %v768_v3 }
 0x126   :  { %v168_v7 = vpop.permute.xlu1 %167  ;;  %v134_v8 = vpop.permute.xlu0 %133 }
 0x127   :  { %v180_v9 = vsub.f32 %v775_v6, %v168_v7  ;;  %v151_v10 = vsub.f32 %v740_v54, %v134_v8 }
 0x129   :  { %v427_v11 = vmul.f32 0.5, %v151_v10  ;;  %v270_v12 = vmul.f32 2.0, %v151_v10  ;;  %v248_v22 = vrot.slane %v151_v10, 2  ;;  %v186_v60 = vmul.f32 2.0, %v180_v9 }
 0x12a   :  { %v136_v13 = vpop.permute.xlu1 %135  ;;  %v138_v14 = vpop.permute.xlu0 %137 }
 0x12b   :  { %v152_v15 = vsub.f32 %v747_v58, %v136_v13  ;;  %v153_v16 = vsub.f32 %v750_v59, %v138_v14  ;;  %v595_v17 = vclamps-f32 %v427_v11, 3.0  ;;  %v283_v23 = vrot.slane %v270_v12, 1 }
 0x12c   :  { %v184_v58 = vmul.f32 2.0, %v178_v4  ;;  %v185_v59 = vmul.f32 2.0, %v179_v5 }
 0x12d   :  { %v249_v18 = vrot.slane %v152_v15, 2  ;;  %v271_v19 = vmul.f32 2.0, %v152_v15  ;;  %v251_v20 = vrot.slane %v153_v16, 2  ;;  %v272_v21 = vmul.f32 2.0, %v153_v16  ;;  %539 = vrot.lane.b32.xlu0 %v595_v17, %s662_s15 }
 0x12e   :  { %v140_v24 = vpop.permute.xlu1 %139  ;;  %v428_v25 = vmul.f32 0.5, %v152_v15  ;;  %v429_v26 = vmul.f32 0.5, %v153_v16 }
 0x12f   :  { %v284_v27 = vrot.slane %v271_v19, 1  ;;  %v783_v28 = vsub.f32 %v761_v0, %v140_v24  ;;  %v266_v29 = vadd.f32 %v251_v20, %v153_v16  ;;  %v286_v30 = vrot.slane %v272_v21, 1 }
 0x130   :  { %v596_v31 = vclamps-f32 %v428_v25, 3.0  ;;  %v597_v32 = vclamps-f32 %v429_v26, 3.0  ;;  %v250_v33 = vsel %vm247_vm6, %v248_v22, %v249_v18  ;;  %v252_v34 = vsel %vm247_vm6, %v249_v18, %v251_v20 }
 0x131   :  { %v430_v35 = vmul.f32 0.5, %v783_v28  ;;  %v301_v36 = vsub.f32 %v266_v29, %v286_v30  ;;  %v264_v37 = vadd.f32 %v250_v33, %v151_v10  ;;  %v285_v38 = vsel %vm282_vm7, %v283_v23, %v284_v27 }
 0x132   :  { %541 = vrot.lane.b32.xlu1 %v596_v31, %s662_s15  ;;  %543 = vrot.lane.b32.xlu0 %v597_v32, %s662_s15  ;;  %v265_v39 = vadd.f32 %v252_v34, %v152_v15  ;;  %v287_v42 = vsel %vm282_vm7, %v284_v27, %v286_v30  ;;  %v253_v17 = vrot.slane %v783_v28, 2  ;;  %v273_v18 = vmul.f32 2.0, %v783_v28 }
 0x133   :  { %v598_v40 = vclamps-f32 %v430_v35, 3.0  ;;  %v405_v41 = vmul.f32 -0.25, %v301_v36  ;;  %v299_v43 = vsub.f32 %v264_v37, %v285_v38  ;;  %v411_v20 = vmul.f32 2.0, %v301_v36 }
 0x134   :  { %v792_v44 = vsub.f32 %v265_v39, %v287_v42 }
 0x135   :  { %v585_v45 = vclamps-f32 %v405_v41, 3.0  ;;  %v403_v46 = vmul.f32 -0.25, %v299_v43  ;;  %v409_v26 = vmul.f32 2.0, %v299_v43 }
 0x136   :  { %545 = vrot.lane.b32.xlu1 %v598_v40, %s662_s15 }
 0x137   :  { %455 = vrot.lane.b32.xlu0 %v585_v45, %s662_s15  ;;  %v583_v47 = vclamps-f32 %v403_v46, 3.0 }
 0x13b   :  { %451 = vrot.lane.b32.xlu0 %v583_v47, %s662_s15 }
 0x177   :  { %v218_v49 = vpop.permute.xlu0 %217 }
 0x178   :  { %v235_v50 = vsub.f32 %v181_v48, %v218_v49 }
 0x17a   :  { %v311_v61 = vrot.slane %v235_v50, 2  ;;  %v333_v63 = vrot.slane %v235_v50, 1  ;;  %v362_v3 = vrot.slane %v235_v50, 4 }
 0x17b   :  { %v220_v53 = vpop.permute.xlu1 %219  ;;  %v222_v54 = vpop.permute.xlu0 %221 }
 0x17c   :  { %v797_v55 = vsub.f32 %v182_v51, %v220_v53  ;;  %v799_v56 = vsub.f32 %v183_v52, %v222_v54 }
 0x17e   :  { %v312_v0 = vrot.slane %v797_v55, 2  ;;  %v334_v2 = vrot.slane %v797_v55, 1  ;;  %v363_v57 = vrot.slane %v797_v55, 4  ;;  %v314_v62 = vrot.slane %v799_v56, 2 }
 0x17f   :  { %v336_v7 = vrot.slane %v799_v56, 1  ;;  %v365_v8 = vrot.slane %v799_v56, 4  ;;  %v224_v10 = vpop.permute.xlu1 %223  ;;  %v226_v11 = vpop.permute.xlu0 %225 }
 0x180   :  { %v329_v4 = vadd.f32 %v314_v62, %v799_v56  ;;  %v808_v5 = vsub.f32 %v184_v58, %v224_v10  ;;  %v810_v9 = vsub.f32 %v185_v59, %v226_v11  ;;  %v313_v12 = vsel %vm247_vm6, %v311_v61, %v312_v0 }
 0x181   :  { %v366_v13 = vsel %vm361_vm8, %v363_v57, %v365_v8  ;;  %v327_v14 = vadd.f32 %v313_v12, %v235_v50  ;;  %v335_v15 = vsel %vm282_vm7, %v333_v63, %v334_v2  ;;  %v364_v16 = vsel %vm361_vm8, %v362_v3, %v363_v57 }
 0x182   :  { %v367_v19 = vrot.slane %v808_v5, 4  ;;  %v368_v21 = vrot.slane %v810_v9, 4  ;;  %v351_v24 = vsub.f32 %v329_v4, %v336_v7  ;;  %v825_v25 = vadd.f32 %v366_v13, %v797_v55 }
 0x183   :  { %v228_v22 = vpop.permute.xlu1 %227  ;;  %v142_v23 = vpop.permute.xlu0 %141  ;;  %v349_v30 = vsub.f32 %v327_v14, %v335_v15  ;;  %v830_v31 = vadd.f32 %v364_v16, %v235_v50  ;;  %v315_v35 = vsel %vm247_vm6, %v312_v0, %v314_v62  ;;  %v317_v36 = vrot.slane %v810_v9, 2 }
 0x184   :  { %v240_v27 = vsub.f32 %v186_v60, %v228_v22  ;;  %v828_v29 = vsub.f32 %v764_v1, %v142_v23  ;;  %v357_v32 = vmul.f32 2.0, %v351_v24  ;;  %v386_v33 = vrot.slane %v825_v25, 7 }
 0x185   :  { %v369_v34 = vsel %vm361_vm8, %v367_v19, %v368_v21  ;;  %v355_v42 = vmul.f32 2.0, %v349_v30  ;;  %v385_v43 = vrot.slane %v830_v31, 7  ;;  %v288_v60 = vrot.slane %v273_v18, 1 }
 0x186   :  { %v319_v37 = vrot.slane %v240_v27, 2  ;;  %v370_v38 = vrot.slane %v240_v27, 4  ;;  %v254_v39 = vrot.slane %v828_v29, 2  ;;  %v274_v40 = vmul.f32 2.0, %v828_v29 }
 0x187   :  { %v144_v1 = vpop.permute.xlu1 %143  ;;  %v399_v41 = vsub.f32 %v357_v32, %v386_v33  ;;  %v341_v46 = vrot.slane %v240_v27, 1  ;;  %v397_v52 = vsub.f32 %v355_v42, %v385_v43  ;;  %v404_v61 = vmul.f32 -0.25, %v792_v44 }
 0x188   :  { %v332_v45 = vadd.f32 %v319_v37, %v240_v27  ;;  %v840_v47 = vsub.f32 %v775_v6, %v144_v1  ;;  %v371_v48 = vsel %vm361_vm8, %v368_v21, %v370_v38  ;;  %v289_v49 = vrot.slane %v274_v40, 1 }
 0x189   :  { %v417_v50 = vadd.f32 %v411_v20, %v399_v41  ;;  %v255_v51 = vsel %vm247_vm6, %v253_v17, %v254_v39  ;;  %v379_v59 = vadd.f32 %v371_v48, %v810_v9  ;;  %v415_v6 = vadd.f32 %v409_v26, %v397_v52 }
 0x18a   :  { %v256_v53 = vrot.slane %v840_v47, 2  ;;  %v275_v54 = vmul.f32 2.0, %v840_v47  ;;  %v354_v58 = vsub.f32 %v332_v45, %v341_v46  ;;  %v320_v0 = vsel %vm247_vm6, %v317_v36, %v319_v37 }
 0x18b   :  { %v316_v57 = vrot.slane %v808_v5, 2  ;;  %v339_v8 = vrot.slane %v810_v9, 1  ;;  %v267_v11 = vadd.f32 %v255_v51, %v783_v28  ;;  %v290_v14 = vsel %vm282_vm7, %v288_v60, %v289_v49 }
 0x18c   :  { %v269_v62 = vadd.f32 %v256_v53, %v840_v47  ;;  %v291_v63 = vrot.slane %v275_v54, 1  ;;  %v257_v3 = vsel %vm247_vm6, %v254_v39, %v256_v53  ;;  %v360_v4 = vmul.f32 2.0, %v354_v58 }
 0x18d   :  { %v268_v10 = vadd.f32 %v257_v3, %v828_v29  ;;  %v389_v15 = vrot.slane %v379_v59, 7  ;;  %v338_v16 = vrot.slane %v808_v5, 1  ;;  %v331_v18 = vadd.f32 %v320_v0, %v810_v9 }
 0x18e   :  { %v304_v12 = vsub.f32 %v269_v62, %v291_v63  ;;  %v292_v13 = vsel %vm282_vm7, %v289_v49, %v291_v63  ;;  %v342_v19 = vsel %vm282_vm7, %v339_v8, %v341_v46  ;;  %v423_v21 = vmul.f32 -0.083333336, %v417_v50 }
 0x18f   :  { %v303_v17 = vsub.f32 %v268_v10, %v292_v13  ;;  %v402_v22 = vsub.f32 %v360_v4, %v389_v15  ;;  %v302_v28 = vsub.f32 %v267_v11, %v290_v14  ;;  %v353_v25 = vsub.f32 %v331_v18, %v342_v19 }
 0x190   :  { %v408_v20 = vmul.f32 -0.25, %v304_v12  ;;  %v414_v23 = vmul.f32 2.0, %v304_v12  ;;  %v378_v26 = vadd.f32 %v369_v34, %v808_v5  ;;  %v328_v31 = vadd.f32 %v315_v35, %v797_v55 }
 0x191   :  { %v407_v24 = vmul.f32 -0.25, %v303_v17  ;;  %v337_v9 = vsel %vm282_vm7, %v334_v2, %v336_v7  ;;  %v359_v37 = vmul.f32 2.0, %v353_v25  ;;  %v387_v39 = vsel %vm384_vm9, %v385_v43, %v386_v33 }
 0x192   :  { %v588_v27 = vclamps-f32 %v408_v20, 3.0  ;;  %v420_v30 = vadd.f32 %v414_v23, %v402_v22  ;;  %v388_v38 = vrot.slane %v378_v26, 7  ;;  %v413_v40 = vmul.f32 2.0, %v303_v17 }
 0x193   :  { %v587_v32 = vclamps-f32 %v407_v24, 3.0  ;;  %v350_v1 = vsub.f32 %v328_v31, %v337_v9  ;;  %v318_v34 = vsel %vm247_vm6, %v316_v57, %v317_v36  ;;  %v340_v55 = vsel %vm282_vm7, %v338_v16, %v339_v8 }
 0x194   :  { %461 = vrot.lane.b32.xlu1 %v588_v27, %s662_s15  ;;  %v390_v35 = vsel %vm384_vm9, %v388_v38, %v389_v15  ;;  %v330_v56 = vadd.f32 %v318_v34, %v808_v5  ;;  %v584_v2 = vclamps-f32 %v404_v61, 3.0  ;;  %v406_v7 = vmul.f32 -0.25, %v302_v28 }
 0x195   :  { %459 = vrot.lane.b32.xlu0 %v587_v32, %s662_s15  ;;  %v401_v41 = vsub.f32 %v359_v37, %v390_v35  ;;  %v356_v42 = vmul.f32 2.0, %v350_v1  ;;  %v591_v45 = vclamps-f32 %v423_v21, 3.0  ;;  %v421_v33 = vmul.f32 -0.083333336, %v415_v6 }
 0x196   :  { %v352_v43 = vsub.f32 %v330_v56, %v340_v55  ;;  %v410_v36 = vmul.f32 2.0, %v792_v44  ;;  %v412_v50 = vmul.f32 2.0, %v302_v28  ;;  %v586_v5 = vclamps-f32 %v406_v7, 3.0 }
 0x197   :  { %v419_v46 = vadd.f32 %v413_v40, %v401_v41  ;;  %v398_v48 = vsub.f32 %v356_v42, %v387_v39  ;;  %v426_v51 = vmul.f32 -0.083333336, %v420_v30  ;;  %v589_v53 = vclamps-f32 %v421_v33, 3.0 }
 0x198   :  { %453 = vrot.lane.b32.xlu1 %v584_v2, %s662_s15  ;;  %v358_v49 = vmul.f32 2.0, %v352_v43  ;;  %v431_v0 = vmul.f32 0.5, %v828_v29  ;;  %v432_v10 = vmul.f32 0.5, %v840_v47 }
 0x199   :  { %500 = vrot.lane.b32.xlu0 %v591_v45, %s662_s15  ;;  %v416_v52 = vadd.f32 %v410_v36, %v398_v48  ;;  %v425_v54 = vmul.f32 -0.083333336, %v419_v46  ;;  %v594_v60 = vclamps-f32 %v426_v51, 3.0 }
 0x19a   :  { %v400_v58 = vsub.f32 %v358_v49, %v388_v38  ;;  %v599_v63 = vclamps-f32 %v431_v0, 3.0  ;;  %v600_v12 = vclamps-f32 %v432_v10, 3.0 }
 0x19b   :  { %v422_v61 = vmul.f32 -0.083333336, %v416_v52  ;;  %v593_v44 = vclamps-f32 %v425_v54, 3.0 }
 0x19c   :  { %457 = vrot.lane.b32.xlu1 %v586_v5, %s662_s15  ;;  %v418_v59 = vadd.f32 %v412_v50, %v400_v58 }
 0x19d   :  { %496 = vrot.lane.b32.xlu0 %v589_v53, %s662_s15  ;;  %v590_v57 = vclamps-f32 %v422_v61, 3.0 }
 0x19e   :  { %v424_v62 = vmul.f32 -0.083333336, %v418_v59 }
 0x19f   :  { %v540_v6 = vpop.permute.xlu0 %539 }
 0x1a0   :  { %559 = vst.msk [vmem:[#allocation6 + $0x1e] sm:$0xfc] %vm558_vm10, %v540_v6  ;;  %506 = vrot.lane.b32.xlu1 %v594_v60, %s662_s15  ;;  %v592_v29 = vclamps-f32 %v424_v62, 3.0 }
 0x1a1   :  { %504 = vrot.lane.b32.xlu0 %v593_v44, %s662_s15 }
 0x1a4   :  { %v542_v3 = vpop.permute.xlu1 %541  ;;  %v544_v8 = vpop.permute.xlu0 %543  ;;  %498 = vrot.lane.b32.xlu1 %v590_v57, %s662_s15 }
 0x1a5   :  { %560 = vst.msk [vmem:[#allocation6 + $0x26] sm:$0xff] %vm471_vm11, %v542_v3  ;;  %547 = vrot.lane.b32.xlu0 %v599_v63, %s662_s15 }
 0x1a6   :  { %562 = vst.msk [vmem:[#allocation6 + $0x2e] sm:$0x3] %vm561_vm12, %v544_v8 }
 0x1a8   :  { %v546_v11 = vpop.permute.xlu1 %545  ;;  %502 = vrot.lane.b32.xlu1 %v592_v29, %s662_s15 }
 0x1a9   :  { %563 = vst.msk [vmem:[#allocation6 + $0x4e] sm:$0xfc] %vm558_vm10, %v546_v11  ;;  %v456_v4 = vpop.permute.xlu0 %455 }
 0x1aa   :  { %474 = vst.msk [vmem:[#allocation6 + $0xf] sm:$0x1] %vm473_vm13, %v456_v4 }
 0x1ac   :  { %549 = vrot.lane.b32.xlu1 %v600_v12, %s662_s15 }
 0x1ad   :  { %v452_v13 = vpop.permute.xlu0 %451 }
 0x1ae   :  { %470 = vst.msk [vmem:[#allocation6 - $0x1] sm:$0xfe] %vm469_vm14, %v452_v13 }
 0x206   :  { %v462_v14 = vpop.permute.xlu1 %461 }
 0x207   :  { %477 = vst.msk [vmem:[#allocation6 + $0x3f] sm:$0x1] %vm473_vm13, %v462_v14  ;;  %v460_v47 = vpop.permute.xlu0 %459 }
 0x208   :  { %476 = vst.msk [vmem:[#allocation6 + $0x37] sm:$0xff] %vm471_vm11, %v460_v47 }
 0x20a   :  { %v454_v15 = vpop.permute.xlu1 %453 }
 0x20b   :  { %472 = vst.msk [vmem:[#allocation6 + $0x7] sm:$0xff] %vm471_vm11, %v454_v15  ;;  %v501_v16 = vpop.permute.xlu0 %500 }
 0x20c   :  { %517 = vst.msk [vmem:[#allocation6 + $0x1f] sm:$0x1] %vm473_vm13, %v501_v16 }
 0x20e   :  { %v458_v17 = vpop.permute.xlu1 %457 }
 0x20f   :  { %475 = vst.msk [vmem:[#allocation6 + $0x2f] sm:$0xfe] %vm469_vm14, %v458_v17  ;;  %v497_v18 = vpop.permute.xlu0 %496 }
 0x210   :  { %515 = vst.msk [vmem:[#allocation6 + $0xf] sm:$0xfe] %vm469_vm14, %v497_v18 }
 0x212   :  { %v507_v19 = vpop.permute.xlu1 %506 }
 0x213   :  { %520 = vst.msk [vmem:[#allocation6 + $0x4f] sm:$0x1] %vm473_vm13, %v507_v19  ;;  %v505_v20 = vpop.permute.xlu0 %504 }
 0x214   :  { %519 = vst.msk [vmem:[#allocation6 + $0x47] sm:$0xff] %vm471_vm11, %v505_v20 }
 0x216   :  { %v499_v21 = vpop.permute.xlu1 %498 }
 0x217   :  { %516 = vst.msk [vmem:[#allocation6 + $0x17] sm:$0xff] %vm471_vm11, %v499_v21  ;;  %v548_v22 = vpop.permute.xlu0 %547 }
 0x218   :  { %564 = vst.msk [vmem:[#allocation6 + $0x56] sm:$0xff] %vm471_vm11, %v548_v22 }
 0x21a   :  { %v503_v23 = vpop.permute.xlu1 %502 }
 0x21b   :  { %518 = vst.msk [vmem:[#allocation6 + $0x3f] sm:$0xfe] %vm469_vm14, %v503_v23 }
 0x21e   :  { %v550_v24 = vpop.permute.xlu1 %549 }
 0x21f   :  { %565 = vst.msk [vmem:[#allocation6 + $0x5e] sm:$0x3] %vm561_vm12, %v550_v24 }
 0x220   :  { %642 = shalt.err (!%p639_p9)
}
 0x221   :  { %577 = dma.vmem_to_hbm [thread:$0]  %s572_s18, 1536, %s912_s1, [#allocation5], %s656_s9, %s656_s9, %s657_s10  }
 0x222   :  { %653 = dma.done.wait [#allocation5], 1536  }
 0x223   :  { %654 = vsyncadd [#allocation5], 4294965760 }
 0x224   :  { %581 = vsyncpa [#allocation4], 1 }
 0x225   :  { %582 = vsyncpa [#allocation5], 1 }

</bundles_post_ra>
